<compile_context>
chip_gen: v7x
topology: tpu7x:2x2x1
jax: 0.10.0
libtpu: 0.0.40
codegen_flags: <defaults>
</compile_context>

<pallas_src>
import functools

import jax
import jax.numpy as jnp
from jax import lax
from jax.experimental import pallas as pl
from jax.experimental.pallas import tpu as pltpu

DROPOUT_RATE = 0.5
K_IN = 28 * 28        # 784
K_PAD = 896           # 7 * 128
N1, N2 = 256, 128
N_OUT = 10
N_OUT_PAD = 128

_MASK31 = 0x7FFFFFFF
_KEEP_THRESH = int(DROPOUT_RATE * (1 << 31))   # P(bits >= thresh) = 1 - p


def _keep_mask(shape, seed, salt, row_offset):
    """Counter-based hash -> boolean keep mask. Pure int32 ops (portable)."""
    row = lax.broadcasted_iota(jnp.int32, shape, 0) + row_offset
    col = lax.broadcasted_iota(jnp.int32, shape, 1)
    x = row * jnp.int32(1663952283) + col * jnp.int32(462656397)
    x = x + seed * jnp.int32(668265261) + (salt * 40503 + 1)
    x = x & _MASK31
    x = x ^ (x >> 15)
    x = (x * jnp.int32(2146121773)) & _MASK31
    x = x ^ (x >> 13)
    x = (x * jnp.int32(1759715749)) & _MASK31
    x = x ^ (x >> 16)
    return x >= jnp.int32(_KEEP_THRESH)


def _dropout(h, seed, salt, tile_b):
    row_offset = pl.program_id(0) * tile_b
    keep = _keep_mask(h.shape, seed, salt, row_offset)
    scale = 1.0 / (1.0 - DROPOUT_RATE)
    return jnp.where(keep, h * scale, 0.0)


def mlp_kernel(seed_ref, x_ref, w1_ref, b1_ref, w2_ref, b2_ref, w3_ref, b3_ref,
               o_ref, *, use_dropout, tile_b):
    seed = seed_ref[0]

    x = x_ref[...]                                   # (tile_b, 896) bf16

    # fc1 + relu (+ dropout)
    h = jnp.dot(x, w1_ref[...], preferred_element_type=jnp.float32) + b1_ref[...]
    h = jnp.maximum(h, 0.0)
    if use_dropout:
        h = _dropout(h, seed, salt=1, tile_b=tile_b)

    # fc2 + relu (+ dropout)
    h = jnp.dot(h.astype(jnp.bfloat16), w2_ref[...],
                preferred_element_type=jnp.float32) + b2_ref[...]
    h = jnp.maximum(h, 0.0)
    if use_dropout:
        h = _dropout(h, seed, salt=2, tile_b=tile_b)

    # fc3 (no activation), lane-dense 128-wide output
    o_ref[...] = jnp.dot(h.astype(jnp.bfloat16), w3_ref[...],
                         preferred_element_type=jnp.float32) + b3_ref[...]


def _round_up(n, m):
    return ((n + m - 1) // m) * m


def mlp_forward(x, params, *, use_dropout=False, seed=0):
    """x: (B, 1, 28, 28) or (B, 784). Returns (B, 10) float32."""
    w1, b1, w2, b2, w3, b3 = params
    B = x.shape[0]
    x2 = x.reshape(B, -1).astype(jnp.float32)        # x.view(B, -1)
    assert x2.shape[1] == K_IN

    # Pad K (784 -> 896 = 7*128) and fc3 output (10 -> 128 lanes) with zeros.
    x2 = jnp.pad(x2, ((0, 0), (0, K_PAD - K_IN)))
    w1p = jnp.pad(w1, ((0, K_PAD - K_IN), (0, 0)))
    w3p = jnp.pad(w3, ((0, 0), (0, N_OUT_PAD - N_OUT)))
    b3p = jnp.pad(b3, ((0, 0), (0, N_OUT_PAD - N_OUT)))

    # Batch tiling: tile over the grid so the pipeline overlaps DMA/compute.
    tile_b = min(512, _round_up(B, 8))
    Bp = _round_up(B, tile_b)
    if Bp != B:
        x2 = jnp.pad(x2, ((0, Bp - B), (0, 0)))
    n_tiles = Bp // tile_b

    # bf16 inputs to the MXU, f32 accumulation / elementwise.
    x_bf = x2.astype(jnp.bfloat16)
    w1b = w1p.astype(jnp.bfloat16)
    w2b = w2.astype(jnp.bfloat16)
    w3b = w3p.astype(jnp.bfloat16)
    b1f = b1.astype(jnp.float32)
    b2f = b2.astype(jnp.float32)
    b3f = b3p.astype(jnp.float32)

    seed_arr = jnp.array([seed], dtype=jnp.int32)
    kernel = functools.partial(mlp_kernel, use_dropout=use_dropout, tile_b=tile_b)

    flops = 2 * Bp * (K_PAD * N1 + N1 * N2 + N2 * N_OUT_PAD)
    bytes_accessed = (x_bf.size * 2 + w1b.size * 2 + w2b.size * 2 + w3b.size * 2
                      + (b1f.size + b2f.size + b3f.size) * 4
                      + Bp * N_OUT_PAD * 4)

    out = pl.pallas_call(
        kernel,
        out_shape=jax.ShapeDtypeStruct((Bp, N_OUT_PAD), jnp.float32),
        grid_spec=pltpu.PrefetchScalarGridSpec(
            num_scalar_prefetch=1,                    # dropout seed in SMEM
            grid=(n_tiles,),
            in_specs=[
                pl.BlockSpec((tile_b, K_PAD), lambda i, s: (i, 0)),   # x tile
                pl.BlockSpec((K_PAD, N1), lambda i, s: (0, 0)),       # w1 (resident)
                pl.BlockSpec((1, N1), lambda i, s: (0, 0)),           # b1
                pl.BlockSpec((N1, N2), lambda i, s: (0, 0)),          # w2
                pl.BlockSpec((1, N2), lambda i, s: (0, 0)),           # b2
                pl.BlockSpec((N2, N_OUT_PAD), lambda i, s: (0, 0)),   # w3 (padded)
                pl.BlockSpec((1, N_OUT_PAD), lambda i, s: (0, 0)),    # b3 (padded)
            ],
            out_specs=pl.BlockSpec((tile_b, N_OUT_PAD), lambda i, s: (i, 0)),
        ),
        compiler_params=pltpu.CompilerParams(
            dimension_semantics=("parallel",)),
        cost_estimate=pl.CostEstimate(flops=flops, transcendentals=0,
                                      bytes_accessed=bytes_accessed),
    )(seed_arr, x_bf, w1b, b1f, w2b, b2f, w3b, b3f)

    return out[:B, :N_OUT]


def init_params(key):
    """Deterministic synthetic weights with the shapes nn.Linear implies."""
    k1, k2, k3 = jax.random.split(key, 3)
    w1 = jax.random.normal(k1, (K_IN, N1), jnp.float32) * 0.02
    b1 = jnp.full((1, N1), 0.01, jnp.float32)
    w2 = jax.random.normal(k2, (N1, N2), jnp.float32) * 0.02
    b2 = jnp.full((1, N2), 0.01, jnp.float32)
    w3 = jax.random.normal(k3, (N2, N_OUT), jnp.float32) * 0.02
    b3 = jnp.full((1, N_OUT), 0.01, jnp.float32)
    return (w1, b1, w2, b2, w3, b3)


def mlp_reference(x, params):
    """Pure-JAX f32 reference of the eval-mode forward (dropout = identity)."""
    w1, b1, w2, b2, w3, b3 = params
    h = x.reshape(x.shape[0], -1).astype(jnp.float32)
    h = jnp.maximum(h @ w1 + b1, 0.0)
    h = jnp.maximum(h @ w2 + b2, 0.0)
    return h @ w3 + b3


if __name__ == "__main__":
    key = jax.random.PRNGKey(0)
    kx, kp = jax.random.split(key)

    # MNIST-like NCHW input, small batch.
    x = jax.random.normal(kx, (2, 1, 28, 28), jnp.float32)
    params = init_params(kp)

    # Eval-mode path (PyTorch eval() semantics): check vs f32 reference.
    out = mlp_forward(x, params, use_dropout=False)
    out = jax.block_until_ready(out)
    ref = mlp_reference(x, params)
    assert out.shape == (2, N_OUT)
    # bf16 matmul inputs -> looser tolerance than pure f32.
    assert jnp.allclose(out, ref, atol=5e-2, rtol=5e-2), "mismatch vs reference"

    # Training-mode path (inverted dropout via in-kernel counter-based hash).
    out_do = mlp_forward(x, params, use_dropout=True, seed=123)
    out_do = jax.block_until_ready(out_do)
    assert out_do.shape == (2, N_OUT)
    assert bool(jnp.all(jnp.isfinite(out_do)))

    print("KERNEL_OK")
</pallas_src>

<mosaic_0001>
module attributes {stable_mosaic.version = 11 : i64} {
  func.func @mlp_kernel(%arg0: i32, %arg1: memref<1xi32, #tpu.memory_space<smem>>, %arg2: memref<8x896xbf16, #tpu.memory_space<vmem>>, %arg3: memref<896x256xbf16, #tpu.memory_space<vmem>>, %arg4: memref<1x256xf32, #tpu.memory_space<vmem>>, %arg5: memref<256x128xbf16, #tpu.memory_space<vmem>>, %arg6: memref<1x128xf32, #tpu.memory_space<vmem>>, %arg7: memref<128x128xbf16, #tpu.memory_space<vmem>>, %arg8: memref<1x128xf32, #tpu.memory_space<vmem>>, %arg9: memref<8x128xf32, #tpu.memory_space<vmem>>) attributes {dimension_semantics = [#tpu.dimension_semantics<parallel>], iteration_bounds = array<i64: 1>, scalar_prefetch = 1 : i64, scratch_operands = 0 : i64, tpu.core_type = #tpu.core_type<tc>, window_params = [{transform_indices = @transform_0, window_bounds = array<i64: 8, 896>}, {pipeline_mode = #tpu.pipeline_mode<synchronous>, transform_indices = @transform_1, window_bounds = array<i64: 896, 256>}, {pipeline_mode = #tpu.pipeline_mode<synchronous>, transform_indices = @transform_2, window_bounds = array<i64: 1, 256>}, {pipeline_mode = #tpu.pipeline_mode<synchronous>, transform_indices = @transform_3, window_bounds = array<i64: 256, 128>}, {pipeline_mode = #tpu.pipeline_mode<synchronous>, transform_indices = @transform_4, window_bounds = array<i64: 1, 128>}, {pipeline_mode = #tpu.pipeline_mode<synchronous>, transform_indices = @transform_5, window_bounds = array<i64: 128, 128>}, {pipeline_mode = #tpu.pipeline_mode<synchronous>, transform_indices = @transform_6, window_bounds = array<i64: 1, 128>}, {transform_indices = @transform_7, window_bounds = array<i64: 8, 128>}]} {
    %c0 = arith.constant 0 : index
    %c0_0 = arith.constant 0 : index
    %0 = vector.load %arg2[%c0, %c0_0] : memref<8x896xbf16, #tpu.memory_space<vmem>>, vector<8x896xbf16>
    %c0_1 = arith.constant 0 : index
    %c0_2 = arith.constant 0 : index
    %1 = vector.load %arg3[%c0_1, %c0_2] : memref<896x256xbf16, #tpu.memory_space<vmem>>, vector<896x256xbf16>
    %cst = arith.constant dense<0.000000e+00> : vector<8x256xf32>
    %2 = tpu.matmul %0, %1, %cst {dimension_numbers = #tpu.dot_dimension_numbers<[1], [0], [0], [1], [0, 0, 1, 1], [], []>} : vector<8x896xbf16>, vector<896x256xbf16>, vector<8x256xf32> -> vector<8x256xf32>
    %c0_3 = arith.constant 0 : index
    %c0_4 = arith.constant 0 : index
    %3 = vector.load %arg4[%c0_3, %c0_4] : memref<1x256xf32, #tpu.memory_space<vmem>>, vector<1x256xf32>
    %4 = vector.broadcast %3 : vector<1x256xf32> to vector<8x256xf32>
    %5 = arith.addf %2, %4 : vector<8x256xf32>
    %cst_5 = arith.constant 0.000000e+00 : f32
    %6 = vector.broadcast %cst_5 : f32 to vector<8x256xf32>
    %7 = arith.maximumf %5, %6 : vector<8x256xf32>
    %8 = arith.truncf %7 : vector<8x256xf32> to vector<8x256xbf16>
    %c0_6 = arith.constant 0 : index
    %c0_7 = arith.constant 0 : index
    %9 = vector.load %arg5[%c0_6, %c0_7] : memref<256x128xbf16, #tpu.memory_space<vmem>>, vector<256x128xbf16>
    %cst_8 = arith.constant dense<0.000000e+00> : vector<8x128xf32>
    %10 = tpu.matmul %8, %9, %cst_8 {dimension_numbers = #tpu.dot_dimension_numbers<[1], [0], [0], [1], [0, 0, 1, 1], [], []>} : vector<8x256xbf16>, vector<256x128xbf16>, vector<8x128xf32> -> vector<8x128xf32>
    %c0_9 = arith.constant 0 : index
    %c0_10 = arith.constant 0 : index
    %11 = vector.load %arg6[%c0_9, %c0_10] : memref<1x128xf32, #tpu.memory_space<vmem>>, vector<1x128xf32>
    %12 = vector.broadcast %11 : vector<1x128xf32> to vector<8x128xf32>
    %13 = arith.addf %10, %12 : vector<8x128xf32>
    %cst_11 = arith.constant 0.000000e+00 : f32
    %14 = vector.broadcast %cst_11 : f32 to vector<8x128xf32>
    %15 = arith.maximumf %13, %14 : vector<8x128xf32>
    %16 = arith.truncf %15 : vector<8x128xf32> to vector<8x128xbf16>
    %c0_12 = arith.constant 0 : index
    %c0_13 = arith.constant 0 : index
    %17 = vector.load %arg7[%c0_12, %c0_13] : memref<128x128xbf16, #tpu.memory_space<vmem>>, vector<128x128xbf16>
    %cst_14 = arith.constant dense<0.000000e+00> : vector<8x128xf32>
    %18 = tpu.matmul %16, %17, %cst_14 {dimension_numbers = #tpu.dot_dimension_numbers<[1], [0], [0], [1], [0, 0, 1, 1], [], []>} : vector<8x128xbf16>, vector<128x128xbf16>, vector<8x128xf32> -> vector<8x128xf32>
    %c0_15 = arith.constant 0 : index
    %c0_16 = arith.constant 0 : index
    %19 = vector.load %arg8[%c0_15, %c0_16] : memref<1x128xf32, #tpu.memory_space<vmem>>, vector<1x128xf32>
    %20 = vector.broadcast %19 : vector<1x128xf32> to vector<8x128xf32>
    %21 = arith.addf %18, %20 : vector<8x128xf32>
    %c0_17 = arith.constant 0 : index
    %c0_18 = arith.constant 0 : index
    %22 = vector.load %arg9[%c0_17, %c0_18] : memref<8x128xf32, #tpu.memory_space<vmem>>, vector<8x128xf32>
    tpu.vector_store %arg9[%c0_17, %c0_18], %21 {strides = array<i32>} : memref<8x128xf32, #tpu.memory_space<vmem>>, vector<8x128xf32>,
    return
  }
  func.func @transform_0(%arg0: i32, %arg1: memref<1xi32, #tpu.memory_space<smem>>) -> (i32, i32) {
    %c0_i32 = arith.constant 0 : i32
    %c0_i32_0 = arith.constant 0 : i32
    return %arg0, %c0_i32 : i32, i32
  }
  func.func @transform_1(%arg0: i32, %arg1: memref<1xi32, #tpu.memory_space<smem>>) -> (i32, i32) {
    %c0_i32 = arith.constant 0 : i32
    %c0_i32_0 = arith.constant 0 : i32
    %c0_i32_1 = arith.constant 0 : i32
    return %c0_i32, %c0_i32_0 : i32, i32
  }
  func.func @transform_2(%arg0: i32, %arg1: memref<1xi32, #tpu.memory_space<smem>>) -> (i32, i32) {
    %c0_i32 = arith.constant 0 : i32
    %c0_i32_0 = arith.constant 0 : i32
    %c0_i32_1 = arith.constant 0 : i32
    return %c0_i32, %c0_i32_0 : i32, i32
  }
  func.func @transform_3(%arg0: i32, %arg1: memref<1xi32, #tpu.memory_space<smem>>) -> (i32, i32) {
    %c0_i32 = arith.constant 0 : i32
    %c0_i32_0 = arith.constant 0 : i32
    %c0_i32_1 = arith.constant 0 : i32
    return %c0_i32, %c0_i32_0 : i32, i32
  }
  func.func @transform_4(%arg0: i32, %arg1: memref<1xi32, #tpu.memory_space<smem>>) -> (i32, i32) {
    %c0_i32 = arith.constant 0 : i32
    %c0_i32_0 = arith.constant 0 : i32
    %c0_i32_1 = arith.constant 0 : i32
    return %c0_i32, %c0_i32_0 : i32, i32
  }
  func.func @transform_5(%arg0: i32, %arg1: memref<1xi32, #tpu.memory_space<smem>>) -> (i32, i32) {
    %c0_i32 = arith.constant 0 : i32
    %c0_i32_0 = arith.constant 0 : i32
    %c0_i32_1 = arith.constant 0 : i32
    return %c0_i32, %c0_i32_0 : i32, i32
  }
  func.func @transform_6(%arg0: i32, %arg1: memref<1xi32, #tpu.memory_space<smem>>) -> (i32, i32) {
    %c0_i32 = arith.constant 0 : i32
    %c0_i32_0 = arith.constant 0 : i32
    %c0_i32_1 = arith.constant 0 : i32
    return %c0_i32, %c0_i32_0 : i32, i32
  }
  func.func @transform_7(%arg0: i32, %arg1: memref<1xi32, #tpu.memory_space<smem>>) -> (i32, i32) {
    %c0_i32 = arith.constant 0 : i32
    %c0_i32_0 = arith.constant 0 : i32
    return %arg0, %c0_i32 : i32, i32
  }
}

</mosaic_0001>

<bundles_post_ra>
// kernel: tpu_custom_call.1
= control target key start
LH: loop header
LB: loop body
LE: loop exit
PB: predicated region body
PF: predicated region fallthrough
CT: control target
= control target key end

     0   :  { %14 = vsyncpa [#allocation5], 0  ;;  %s1945_s0 = inlined_call_operand.<no memory space> [shape: s32[1], index: 0, kind: input, shape index: {}]   ;;  %s1946_s1 = inlined_call_operand.hbm [shape: bf16[8,896], index: 1, kind: input, shape index: {}]   ;;  %s1947_s2 = inlined_call_operand.hbm [shape: bf16[896,256], index: 2, kind: input, shape index: {}]   ;;  %s1948_s3 = inlined_call_operand.vmem [shape: f32[1,256], index: 3, kind: input, shape index: {}]   ;;  %s1949_s4 = inlined_call_operand.hbm [shape: bf16[256,128], index: 4, kind: input, shape index: {}]   ;;  %s1950_s5 = inlined_call_operand.vmem [shape: f32[1,128], index: 5, kind: input, shape index: {}]   ;;  %s1951_s6 = inlined_call_operand.hbm [shape: bf16[128,128], index: 6, kind: input, shape index: {}]   ;;  %s1952_s7 = inlined_call_operand.vmem [shape: f32[1,128], index: 7, kind: input, shape index: {}]   ;;  %s1953_s8 = inlined_call_operand.hbm [shape: f32[8,128], index: 8, kind: output, shape index: {}]  }
   0x1   :  { %15 = vsyncpa [#allocation8], 0 }
   0x2   :  { %16 = vsyncpa [#allocation11], 0 }
   0x3   :  { %17 = vsyncpa [#allocation6], 0  ;;  %s1807_s26 = smov [#allocation7]   ;;  %s1689_s30 = scalar_lea.hbm %s1947_s2, 14336 }
   0x4   :  { %s33_s27 = sshll.u32 %s1807_s26, 4  ;;  %p1690_p0 = scmp.ne.s32.totalorder %s1947_s2, %s1689_s30  ;;  %s34_s27 = int_to_ptr.vmem [resolvable:$true] %s33_s27 }
   0x5   :  { %p1693_p1 = scmp.lt.u32.totalorder %s1689_s30, %s1947_s2 }
   0x7   :  { %p1695_p2 = pnand %p1693_p1, %p1690_p0 }
   0x9   :  { %1698 = shalt.err (!%p1695_p2)
}
   0xa   :  { %s1699_s13 = scalar_lea.vmem %s34_s27, 14336  ;;  %p1704_p4 = scmp.lt.s32.totalorder %s34_s27, %s34_s27 }
   0xb   :  { %p1700_p3 = scmp.ne.s32.totalorder %s34_s27, %s1699_s13  ;;  %p1705_p5 = scmp.lt.s32.totalorder %s1699_s13, %s1699_s13 }
   0xd   :  { %p1706_p6 = por %p1705_p5, %p1704_p4 }
   0xf   :  { %p1707_p7 = pnand %p1706_p6, %p1700_p3 }
  0x11   :  { %1710 = shalt.err (!%p1707_p7)
}
  0x12   :  { %s1808_s14 = smov 128   ;;  %s1809_s15 = smov 8  }
  0x13   :  { %39 = dma.hbm_to_vmem [thread:$0]  %s1947_s2, 14336, %s34_s27, [#allocation8], %s1808_s14, %s1808_s14, %s1809_s15  }
  0x14   :  { %s1810_s18 = smov [#allocation4]   ;;  %s1811_s20 = smov [#allocation9]  }
  0x15   :  { %s24_s19 = sshll.u32 %s1810_s18, 4  ;;  %s47_s21 = sshll.u32 %s1811_s20, 4  ;;  %s25_s19 = int_to_ptr.vmem [resolvable:$true] %s24_s19  ;;  %s48_s21 = int_to_ptr.vmem [resolvable:$true] %s47_s21 }
  0x16   :  { %s1711_s0 = scalar_lea.hbm %s1946_s1, 448 }
  0x17   :  { %p1712_p8 = scmp.ne.s32.totalorder %s1946_s1, %s1711_s0  ;;  %p1715_p9 = scmp.lt.u32.totalorder %s1711_s0, %s1946_s1 }
  0x19   :  { %p1717_p10 = pnand %p1715_p9, %p1712_p8 }
  0x1b   :  { %1720 = shalt.err (!%p1717_p10)
}
  0x1c   :  { %s1721_s2 = scalar_lea.vmem %s25_s19, 448  ;;  %p1726_p12 = scmp.lt.s32.totalorder %s25_s19, %s25_s19 }
  0x1d   :  { %p1722_p11 = scmp.ne.s32.totalorder %s25_s19, %s1721_s2  ;;  %p1727_p13 = scmp.lt.s32.totalorder %s1721_s2, %s1721_s2 }
  0x1f   :  { %p1728_p0 = por %p1727_p13, %p1726_p12 }
  0x21   :  { %p1729_p1 = pnand %p1728_p0, %p1722_p11 }
  0x23   :  { %1732 = shalt.err (!%p1729_p1)
}
  0x24   :  { %27 = dma.hbm_to_vmem [thread:$0]  %s1946_s1, 448, %s25_s19, [#allocation5]  }
  0x25   :  { %s1733_s10 = scalar_lea.hbm %s1949_s4, 2048 }
  0x26   :  { %p1734_p2 = scmp.ne.s32.totalorder %s1949_s4, %s1733_s10  ;;  %p1737_p3 = scmp.lt.u32.totalorder %s1733_s10, %s1949_s4 }
  0x28   :  { %p1739_p4 = pnand %p1737_p3, %p1734_p2 }
  0x2a   :  { %1742 = shalt.err (!%p1739_p4)
}
  0x2b   :  { %s1743_s15 = scalar_lea.vmem %s48_s21, 2048  ;;  %p1748_p6 = scmp.lt.s32.totalorder %s48_s21, %s48_s21 }
  0x2c   :  { %p1744_p5 = scmp.ne.s32.totalorder %s48_s21, %s1743_s15  ;;  %p1749_p7 = scmp.lt.s32.totalorder %s1743_s15, %s1743_s15 }
  0x2e   :  { %p1750_p8 = por %p1749_p7, %p1748_p6 }
  0x30   :  { %p1751_p9 = pnand %p1750_p8, %p1744_p5 }
  0x32   :  { %1754 = shalt.err (!%p1751_p9)
}
  0x33   :  { %s1812_s1 = smov 64   ;;  %s1813_s16 = smov 4  }
  0x34   :  { %53 = dma.hbm_to_vmem [thread:$0]  %s1949_s4, 2048, %s48_s21, [#allocation8], %s1812_s1, %s1812_s1, %s1813_s16  }
  0x35   :  { %s1814_s19 = smov [#allocation10]   ;;  %s1755_s0 = scalar_lea.hbm %s1951_s6, 1024 }
  0x36   :  { %s61_s20 = sshll.u32 %s1814_s19, 4  ;;  %p1756_p10 = scmp.ne.s32.totalorder %s1951_s6, %s1755_s0  ;;  %s62_s20 = int_to_ptr.vmem [resolvable:$true] %s61_s20 }
  0x37   :  { %p1759_p11 = scmp.lt.u32.totalorder %s1755_s0, %s1951_s6 }
  0x39   :  { %p1761_p12 = pnand %p1759_p11, %p1756_p10 }
  0x3b   :  { %1764 = shalt.err (!%p1761_p12)
}
  0x3c   :  { %s1765_s2 = scalar_lea.vmem %s62_s20, 1024  ;;  %p1770_p0 = scmp.lt.s32.totalorder %s62_s20, %s62_s20 }
  0x3d   :  { %p1766_p13 = scmp.ne.s32.totalorder %s62_s20, %s1765_s2  ;;  %p1771_p1 = scmp.lt.s32.totalorder %s1765_s2, %s1765_s2 }
  0x3f   :  { %p1772_p2 = por %p1771_p1, %p1770_p0 }
  0x41   :  { %p1773_p3 = pnand %p1772_p2, %p1766_p13 }
  0x43   :  { %1776 = shalt.err (!%p1773_p3)
}
  0x44   :  { %67 = dma.hbm_to_vmem [thread:$0]  %s1951_s6, 1024, %s62_s20, [#allocation11], %s1812_s1, %s1812_s1, %s1813_s16  }
  0x45   :  { %1799 = dma.done.wait [#allocation5], 448  }
  0x46   :  { %1800 = vsyncadd [#allocation5], 4294966848 }
  0x47   :  { %1801 = dma.done.wait [#allocation8], 16384  }
  0x48   :  { %1802 = vsyncadd [#allocation8], 4294950912 }
  0x49   :  { %1803 = dma.done.wait [#allocation11], 1024  }
  0x4a   :  { %1804 = vsyncadd [#allocation11], 4294966272  ;;  %v1490_v0 = vld [vmem:[#allocation7 + $0x104] ss:$8 sps:$4 sm:$0xff]   ;;  %v1492_v1 = vld [vmem:[#allocation7 + $0x100] ss:$8 sps:$4 sm:$0xff]  }
  0x4b   :  { %837 = vmatprep.subr.bf16.mxu0 %v1490_v0  ;;  %v1493_v2 = vld [vmem:[#allocation7 + $0x114] ss:$8 sps:$4 sm:$0xff]   ;;  %v1495_v3 = vld [vmem:[#allocation7 + $0x110] ss:$8 sps:$4 sm:$0xff]   ;;  %v1496_v4 = vld [vmem:[#allocation7 + $0x124] ss:$8 sps:$4 sm:$0xff]  }
  0x4c   :  { %838 = vmatpush1.bf16.msra.mxu0 %v1492_v1  ;;  %v1498_v5 = vld [vmem:[#allocation7 + $0x120] ss:$8 sps:$4 sm:$0xff]   ;;  %v1499_v6 = vld [vmem:[#allocation7 + $0x134] ss:$8 sps:$4 sm:$0xff]   ;;  %v1501_v7 = vld [vmem:[#allocation7 + $0x130] ss:$8 sps:$4 sm:$0xff]  }
  0x4d   :  { %839 = vmatprep.subr.bf16.mxu0 %v1493_v2  ;;  %v1502_v8 = vld [vmem:[#allocation7 + $0x144] ss:$8 sps:$4 sm:$0xff]   ;;  %v1504_v9 = vld [vmem:[#allocation7 + $0x140] ss:$8 sps:$4 sm:$0xff]   ;;  %v1505_v10 = vld [vmem:[#allocation7 + $0x154] ss:$8 sps:$4 sm:$0xff]  }
  0x4e   :  { %v1507_v11 = vld [vmem:[#allocation7 + $0x150] ss:$8 sps:$4 sm:$0xff]   ;;  %v1508_v12 = vld [vmem:[#allocation7 + $0x164] ss:$8 sps:$4 sm:$0xff]   ;;  %v1510_v15 = vld [vmem:[#allocation7 + $0x160] ss:$8 sps:$4 sm:$0xff]  }
  0x4f   :  { %v1912_v13 = vld [vmem:[#allocation4 + $0x8] sm:$0xff]  ;;  %v1511_v16 = vld [vmem:[#allocation7 + $0x174] ss:$8 sps:$4 sm:$0xff]   ;;  %v1516_v19 = vld [vmem:[#allocation7 + $0x180] ss:$8 sps:$4 sm:$0xff]   ;;  %vm1817_vm0 = vmmov 0  }
  0x50   :  { %840 = vmatpush1.bf16.msra.mxu0 %v1495_v3  ;;  %v1273_v14 = vcombine.high %v1912_v13, %v1912_v13  ;;  %v1513_v17 = vld [vmem:[#allocation7 + $0x170] ss:$8 sps:$4 sm:$0xff]   ;;  %v1514_v18 = vld [vmem:[#allocation7 + $0x184] ss:$8 sps:$4 sm:$0xff]   ;;  %v1517_v20 = vld [vmem:[#allocation7 + $0x194] ss:$8 sps:$4 sm:$0xff]   ;;  %v1272_v54 = vcombine.low %v1912_v13, %v1912_v13 }
  0x51   :  { %841 = vmatprep.subr.bf16.mxu0 %v1496_v4  ;;  %v1561_v21 = vld [vmem:[#allocation7 + $0x4] ss:$8 sps:$4 sm:$0xff]   ;;  %v1563_v22 = vld [vmem:[#allocation7] ss:$8 sps:$4 sm:$0xff]   ;;  %v1567_v23 = vld [vmem:[#allocation7 + $0x14] ss:$8 sps:$4 sm:$0xff]  }
  0x52   :  { %869 = vmatprep.mubr.bf16.mxu0 %v1273_v14  ;;  %796 = vmatprep.subr.bf16.mxu1 %v1561_v21  ;;  %v1569_v24 = vld [vmem:[#allocation7 + $0x10] ss:$8 sps:$4 sm:$0xff]   ;;  %v1520_v26 = vld [vmem:[#allocation7 + $0x1a4] ss:$8 sps:$4 sm:$0xff]   ;;  %v1522_v28 = vld [vmem:[#allocation7 + $0x1a0] ss:$8 sps:$4 sm:$0xff]  }
  0x53   :  { %797 = vmatpush1.bf16.msra.mxu1 %v1563_v22  ;;  %v1519_v25 = vld [vmem:[#allocation7 + $0x190] ss:$8 sps:$4 sm:$0xff]   ;;  %v1573_v27 = vld [vmem:[#allocation7 + $0x24] ss:$8 sps:$4 sm:$0xff]   ;;  %v1575_v29 = vld [vmem:[#allocation7 + $0x20] ss:$8 sps:$4 sm:$0xff]  }
  0x54   :  { %842 = vmatpush1.bf16.msra.mxu0 %v1498_v5  ;;  %798 = vmatprep.subr.bf16.mxu1 %v1567_v23  ;;  %v1579_v30 = vld [vmem:[#allocation7 + $0x34] ss:$8 sps:$4 sm:$0xff]   ;;  %v1525_v32 = vld [vmem:[#allocation7 + $0x1b0] ss:$8 sps:$4 sm:$0xff]   ;;  %v1585_v34 = vld [vmem:[#allocation7 + $0x44] ss:$8 sps:$4 sm:$0xff]  }
  0x55   :  { %843 = vmatprep.subr.bf16.mxu0 %v1499_v6  ;;  %v1523_v31 = vld [vmem:[#allocation7 + $0x1b4] ss:$8 sps:$4 sm:$0xff]   ;;  %v1581_v33 = vld [vmem:[#allocation7 + $0x30] ss:$8 sps:$4 sm:$0xff]   ;;  %v1526_v35 = vld [vmem:[#allocation7 + $0x1c4] ss:$8 sps:$4 sm:$0xff]  }
  0x56   :  { %v1528_v36 = vld [vmem:[#allocation7 + $0x1c0] ss:$8 sps:$4 sm:$0xff]   ;;  %v1591_v38 = vld [vmem:[#allocation7 + $0x54] ss:$8 sps:$4 sm:$0xff]   ;;  %v1531_v40 = vld [vmem:[#allocation7 + $0x1d0] ss:$8 sps:$4 sm:$0xff]  }
  0x57   :  { %799 = vmatpush1.bf16.msra.mxu1 %v1569_v24  ;;  %v1587_v37 = vld [vmem:[#allocation7 + $0x40] ss:$8 sps:$4 sm:$0xff]   ;;  %v1529_v39 = vld [vmem:[#allocation7 + $0x1d4] ss:$8 sps:$4 sm:$0xff]   ;;  %v1593_v41 = vld [vmem:[#allocation7 + $0x50] ss:$8 sps:$4 sm:$0xff]  }
  0x58   :  { %844 = vmatpush1.bf16.msra.mxu0 %v1501_v7  ;;  %800 = vmatprep.subr.bf16.mxu1 %v1573_v27  ;;  %v1597_v42 = vld [vmem:[#allocation7 + $0x64] ss:$8 sps:$4 sm:$0xff]   ;;  %v1534_v44 = vld [vmem:[#allocation7 + $0x1e0] ss:$8 sps:$4 sm:$0xff]   ;;  %v1603_v46 = vld [vmem:[#allocation7 + $0x74] ss:$8 sps:$4 sm:$0xff]  }
  0x59   :  { %845 = vmatprep.subr.bf16.mxu0 %v1502_v8  ;;  %v1532_v43 = vld [vmem:[#allocation7 + $0x1e4] ss:$8 sps:$4 sm:$0xff]   ;;  %v1599_v45 = vld [vmem:[#allocation7 + $0x60] ss:$8 sps:$4 sm:$0xff]   ;;  %v1535_v47 = vld [vmem:[#allocation7 + $0x1f4] ss:$8 sps:$4 sm:$0xff]  }
  0x5a   :  { %v1537_v48 = vld [vmem:[#allocation7 + $0x1f0] ss:$8 sps:$4 sm:$0xff]   ;;  %v1609_v50 = vld [vmem:[#allocation7 + $0x84] ss:$8 sps:$4 sm:$0xff]   ;;  %v1540_v52 = vld [vmem:[#allocation7 + $0x200] ss:$8 sps:$4 sm:$0xff]  }
  0x5b   :  { %801 = vmatpush1.bf16.msra.mxu1 %v1575_v29  ;;  %v1605_v49 = vld [vmem:[#allocation7 + $0x70] ss:$8 sps:$4 sm:$0xff]   ;;  %v1542_v51 = vld [vmem:[#allocation7 + $0x204] ss:$8 sps:$4 sm:$0xff]   ;;  %v1611_v55 = vld [vmem:[#allocation7 + $0x80] ss:$8 sps:$4 sm:$0xff]  }
  0x5c   :  { %846 = vmatpush1.bf16.msra.mxu0 %v1504_v9  ;;  %802 = vmatprep.subr.bf16.mxu1 %v1579_v30  ;;  %v1916_v53 = vld [vmem:[#allocation4 + $0x10] sm:$0xff]  ;;  %v1623_v61 = vld [vmem:[#allocation7 + $0xa4] ss:$8 sps:$4 sm:$0xff]   ;;  %v1546_v63 = vld [vmem:[#allocation7 + $0x220] ss:$8 sps:$4 sm:$0xff]   ;;  %s1818_s10 = smov [#allocation12]  }
  0x5d   :  { %847 = vmatprep.subr.bf16.mxu0 %v1505_v10  ;;  %v1615_v56 = vld [vmem:[#allocation7 + $0x94] ss:$8 sps:$4 sm:$0xff]   ;;  %v1275_v58 = vcombine.high %v1916_v53, %v1916_v53  ;;  %v1543_v59 = vld [vmem:[#allocation7 + $0x210] ss:$8 sps:$4 sm:$0xff]   ;;  %v1548_v62 = vld [vmem:[#allocation7 + $0x224] ss:$8 sps:$4 sm:$0xff]  }
  0x5e   :  { %v1545_v57 = vld [vmem:[#allocation7 + $0x214] ss:$8 sps:$4 sm:$0xff]   ;;  %v1617_v60 = vld [vmem:[#allocation7 + $0x90] ss:$8 sps:$4 sm:$0xff]   ;;  %v1625_v0 = vld [vmem:[#allocation7 + $0xa0] ss:$8 sps:$4 sm:$0xff]  }
  0x5f   :  { %803 = vmatpush1.bf16.msra.mxu1 %v1581_v33  ;;  %v1629_v1 = vld [vmem:[#allocation7 + $0xb4] ss:$8 sps:$4 sm:$0xff]   ;;  %v1631_v3 = vld [vmem:[#allocation7 + $0xb0] ss:$8 sps:$4 sm:$0xff]   ;;  %v83_v4 = vld [vmem:[#allocation4] sm:$0xff]  ;;  %s1259_s11 = sshll.u32 %s1818_s10, 4  ;;  %s1260_s11 = int_to_ptr.vmem [resolvable:$true] %s1259_s11 }
  0x60   :  { %848 = vmatpush1.bf16.msra.mxu0 %v1507_v11  ;;  %804 = vmatprep.subr.bf16.mxu1 %v1585_v34  ;;  %v1551_v2 = vld [vmem:[#allocation7 + $0x234] ss:$8 sps:$4 sm:$0xff]   ;;  %v1549_v5 = vld [vmem:[#allocation7 + $0x230] ss:$8 sps:$4 sm:$0xff]   ;;  %v1635_v6 = vld [vmem:[#allocation7 + $0xc4] ss:$8 sps:$4 sm:$0xff]   ;;  %v1271_v7 = vcombine.high %v83_v4, %v83_v4  ;;  %v1270_v27 = vcombine.low %v83_v4, %v83_v4  ;;  %p1782_p5 = scmp.lt.s32.totalorder %s1260_s11, %s1260_s11 }
  0x61   :  { %849 = vmatprep.subr.bf16.mxu0 %v1508_v12  ;;  %v1554_v8 = vld [vmem:[#allocation7 + $0x244] ss:$8 sps:$4 sm:$0xff]   ;;  %v1552_v9 = vld [vmem:[#allocation7 + $0x240] ss:$8 sps:$4 sm:$0xff]   ;;  %v1641_v11 = vld [vmem:[#allocation7 + $0xd4] ss:$8 sps:$4 sm:$0xff]  }
  0x62   :  { %828 = vmatprep.mubr.bf16.mxu1 %v1271_v7  ;;  %v1637_v10 = vld [vmem:[#allocation7 + $0xc0] ss:$8 sps:$4 sm:$0xff]   ;;  %v1557_v12 = vld [vmem:[#allocation7 + $0x254] ss:$8 sps:$4 sm:$0xff]   ;;  %v1555_v13 = vld [vmem:[#allocation7 + $0x250] ss:$8 sps:$4 sm:$0xff]  }
  0x63   :  { %805 = vmatpush1.bf16.msra.mxu1 %v1587_v37  ;;  %v1643_v14 = vld [vmem:[#allocation7 + $0xd0] ss:$8 sps:$4 sm:$0xff]   ;;  %v1665_v23 = vld [vmem:[#allocation9 + $0x40] sm:$0xff]   ;;  %v1578_v29 = vld [vmem:[#allocation7 + $0x294] ss:$8 sps:$4 sm:$0xff]  }
  0x64   :  { %850 = vmatpush1.bf16.msra.mxu0 %v1510_v15  ;;  %806 = vmatprep.subr.bf16.mxu1 %v1591_v38  ;;  %v1647_v15 = vld [vmem:[#allocation7 + $0xe4] ss:$8 sps:$4 sm:$0xff]   ;;  %v1655_v21 = vld [vmem:[#allocation7 + $0xf0] ss:$8 sps:$4 sm:$0xff]   ;;  %v1590_v37 = vld [vmem:[#allocation7 + $0x2b4] ss:$8 sps:$4 sm:$0xff]  }
  0x65   :  { %851 = vmatprep.subr.bf16.mxu0 %v1511_v16  ;;  %v1560_v16 = vld [vmem:[#allocation7 + $0x264] ss:$8 sps:$4 sm:$0xff]   ;;  %v1564_v22 = vld [vmem:[#allocation7 + $0x270] ss:$8 sps:$4 sm:$0xff]   ;;  %v1664_v4 = vld [vmem:[#allocation4 + $0x18] ss:$0 sps:$4 sm:$0xff]  }
  0x66   :  { %v1572_v24 = vld [vmem:[#allocation7 + $0x284] ss:$8 sps:$4 sm:$0xff]   ;;  %v1670_v34 = vld [vmem:[#allocation9 + $0x10] sm:$0xff]   ;;  %v1672_v38 = vld [vmem:[#allocation9 + $0x18] sm:$0xff]  }
  0x67   :  { %807 = vmatpush1.bf16.msra.mxu1 %v1593_v41  ;;  %v1668_v30 = vld [vmem:[#allocation9 + $0x8] sm:$0xff]   ;;  %v1677_v7 = vld [vmem:[#allocation9 + $0x70] sm:$0xff]  }
  0x68   :  { %852 = vmatpush1.bf16.msra.mxu0 %v1513_v17  ;;  %808 = vmatprep.subr.bf16.mxu1 %v1597_v42  ;;  %v1558_v17 = vld [vmem:[#allocation7 + $0x260] ss:$8 sps:$4 sm:$0xff]   ;;  %v1584_v33 = vld [vmem:[#allocation7 + $0x2a4] ss:$8 sps:$4 sm:$0xff]  }
  0x69   :  { %853 = vmatprep.subr.bf16.mxu0 %v1514_v18  ;;  %v1566_v18 = vld [vmem:[#allocation7 + $0x274] ss:$8 sps:$4 sm:$0xff]   ;;  %v1596_v41 = vld [vmem:[#allocation7 + $0x2c4] ss:$8 sps:$4 sm:$0xff]  }
  0x6a   :  { %v1674_v42 = vld [vmem:[#allocation9 + $0x20] sm:$0xff]  }
  0x6b   :  { %809 = vmatpush1.bf16.msra.mxu1 %v1599_v45  ;;  %v1600_v45 = vld [vmem:[#allocation7 + $0x2d0] ss:$8 sps:$4 sm:$0xff]  }
  0x6c   :  { %854 = vmatpush1.bf16.msra.mxu0 %v1516_v19  ;;  %810 = vmatprep.subr.bf16.mxu1 %v1603_v46  ;;  %v1649_v19 = vld [vmem:[#allocation7 + $0xe0] ss:$8 sps:$4 sm:$0xff]   ;;  %v1608_v46 = vld [vmem:[#allocation7 + $0x2e4] ss:$8 sps:$4 sm:$0xff]  }
  0x6d   :  { %855 = vmatprep.subr.bf16.mxu0 %v1517_v20  ;;  %v1653_v20 = vld [vmem:[#allocation7 + $0xf4] ss:$8 sps:$4 sm:$0xff]  }
  0x6f   :  { %811 = vmatpush1.bf16.msra.mxu1 %v1605_v49  ;;  %v1612_v49 = vld [vmem:[#allocation7 + $0x2f0] ss:$8 sps:$4 sm:$0xff]  }
  0x70   :  { %856 = vmatpush1.bf16.msra.mxu0 %v1519_v25  ;;  %812 = vmatprep.subr.bf16.mxu1 %v1609_v50  ;;  %v1666_v25 = vld [vmem:[#allocation9] sm:$0xff]  }
  0x71   :  { %857 = vmatprep.subr.bf16.mxu0 %v1520_v26  ;;  %v1570_v26 = vld [vmem:[#allocation7 + $0x280] ss:$8 sps:$4 sm:$0xff]   ;;  %v1622_v50 = vld [vmem:[#allocation7 + $0x304] ss:$8 sps:$4 sm:$0xff]  }
  0x73   :  { %813 = vmatpush1.bf16.msra.mxu1 %v1611_v55  ;;  %v1626_v55 = vld [vmem:[#allocation7 + $0x310] ss:$8 sps:$4 sm:$0xff]  }
  0x74   :  { %858 = vmatpush1.bf16.msra.mxu0 %v1522_v28  ;;  %814 = vmatprep.subr.bf16.mxu1 %v1615_v56  ;;  %v1667_v28 = vld [vmem:[#allocation9 + $0x48] sm:$0xff]   ;;  %v1815_v56 = vmov 0  }
  0x75   :  { %859 = vmatprep.subr.bf16.mxu0 %v1523_v31  ;;  %v1576_v31 = vld [vmem:[#allocation7 + $0x290] ss:$8 sps:$4 sm:$0xff]  }
  0x77   :  { %815 = vmatpush1.bf16.msra.mxu1 %v1617_v60  ;;  %v1638_v60 = vld [vmem:[#allocation7 + $0x330] ss:$8 sps:$4 sm:$0xff]  }
  0x78   :  { %860 = vmatpush1.bf16.msra.mxu0 %v1525_v32  ;;  %816 = vmatprep.subr.bf16.mxu1 %v1623_v61  ;;  %v1669_v32 = vld [vmem:[#allocation9 + $0x50] sm:$0xff]   ;;  %v1646_v61 = vld [vmem:[#allocation7 + $0x344] ss:$8 sps:$4 sm:$0xff]  }
  0x79   :  { %861 = vmatprep.subr.bf16.mxu0 %v1526_v35  ;;  %v1582_v35 = vld [vmem:[#allocation7 + $0x2a0] ss:$8 sps:$4 sm:$0xff]  }
  0x7b   :  { %817 = vmatpush1.bf16.msra.mxu1 %v1625_v0  ;;  %v1658_v0 = vld [vmem:[#allocation7 + $0x364] ss:$8 sps:$4 sm:$0xff]  }
  0x7c   :  { %862 = vmatpush1.bf16.msra.mxu0 %v1528_v36  ;;  %818 = vmatprep.subr.bf16.mxu1 %v1629_v1  ;;  %v1671_v36 = vld [vmem:[#allocation9 + $0x58] sm:$0xff]   ;;  %v1656_v1 = vld [vmem:[#allocation7 + $0x360] ss:$8 sps:$4 sm:$0xff]  }
  0x7d   :  { %863 = vmatprep.subr.bf16.mxu0 %v1529_v39  ;;  %v1588_v39 = vld [vmem:[#allocation7 + $0x2b0] ss:$8 sps:$4 sm:$0xff]  }
  0x7f   :  { %819 = vmatpush1.bf16.msra.mxu1 %v1631_v3  ;;  %v1661_v3 = vld [vmem:[#allocation7 + $0x370] ss:$8 sps:$4 sm:$0xff]  }
  0x80   :  { %864 = vmatpush1.bf16.msra.mxu0 %v1531_v40  ;;  %820 = vmatprep.subr.bf16.mxu1 %v1635_v6  ;;  %v1673_v40 = vld [vmem:[#allocation9 + $0x60] sm:$0xff]   ;;  %v1676_v6 = vld [vmem:[#allocation9 + $0x28] sm:$0xff]  }
  0x81   :  { %865 = vmatprep.subr.bf16.mxu0 %v1532_v43  ;;  %v1594_v43 = vld [vmem:[#allocation7 + $0x2c0] ss:$8 sps:$4 sm:$0xff]  }
  0x83   :  { %821 = vmatpush1.bf16.msra.mxu1 %v1637_v10  ;;  %v1680_v10 = vld [vmem:[#allocation9 + $0x38] sm:$0xff]  }
  0x84   :  { %866 = vmatpush1.bf16.msra.mxu0 %v1534_v44  ;;  %822 = vmatprep.subr.bf16.mxu1 %v1641_v11  ;;  %v1602_v44 = vld [vmem:[#allocation7 + $0x2d4] ss:$8 sps:$4 sm:$0xff]   ;;  %v1816_v11 = vmov 0.0  }
  0x85   :  { %867 = vmatprep.subr.bf16.mxu0 %v1535_v47  ;;  %v1606_v47 = vld [vmem:[#allocation7 + $0x2e0] ss:$8 sps:$4 sm:$0xff]  }
  0x87   :  { %823 = vmatpush1.bf16.msra.mxu1 %v1643_v14 }
  0x88   :  { %868 = vmatpush1.bf16.msra.mxu0 %v1537_v48  ;;  %824 = vmatprep.subr.bf16.mxu1 %v1647_v15  ;;  %v1614_v48 = vld [vmem:[#allocation7 + $0x2f4] ss:$8 sps:$4 sm:$0xff]  }
  0x89   :  { %878 = vmatprep.subr.bf16.mxu0 %v1542_v51  ;;  %v1274_v51 = vcombine.low %v1916_v53, %v1916_v53  ;;  %v1644_v53 = vld [vmem:[#allocation7 + $0x340] ss:$8 sps:$4 sm:$0xff]  }
  0x8b   :  { %870 = vmatmul.mubr.bf16.vlgmr.msra.gmra.mrb[0].mxu0 %v1272_v54  ;;  %825 = vmatpush1.bf16.msra.mxu1 %v1649_v19  ;;  %v1628_v54 = vld [vmem:[#allocation7 + $0x314] ss:$8 sps:$4 sm:$0xff]   ;;  %v199_v19 = vld [vmem:[%s1948_s3] sm:$0x3] }
  0x8c   :  { %879 = vmatpush1.bf16.msra.mxu0 %v1540_v52  ;;  %910 = vmatprep.mubr.bf16.mxu0 %v1275_v58  ;;  %v1620_v52 = vld [vmem:[#allocation7 + $0x300] ss:$8 sps:$4 sm:$0xff]  }
  0x8d   :  { %880 = vmatprep.subr.bf16.mxu0 %v1545_v57  ;;  %826 = vmatprep.subr.bf16.mxu1 %v1653_v20  ;;  %v1634_v57 = vld [vmem:[#allocation7 + $0x324] ss:$8 sps:$4 sm:$0xff]   ;;  %v1632_v58 = vld [vmem:[#allocation7 + $0x320] ss:$8 sps:$4 sm:$0xff]  }
  0x8f   :  { %827 = vmatpush1.bf16.msra.mxu1 %v1655_v21 }
  0x90   :  { %881 = vmatpush1.bf16.msra.mxu0 %v1543_v59  ;;  %1415 = vmatprep.subr.bf16.mxu1 %v1665_v23  ;;  %v1640_v59 = vld [vmem:[#allocation7 + $0x334] ss:$8 sps:$4 sm:$0xff]  }
  0x91   :  { %882 = vmatprep.subr.bf16.mxu0 %v1548_v62  ;;  %v1652_v62 = vld [vmem:[#allocation7 + $0x354] ss:$8 sps:$4 sm:$0xff]  }
  0x92   :  { %829 = vmatmul.mubr.bf16.vlgmr.msra.gmra.mrb[0].mxu1 %v1270_v27 }
  0x93   :  { %1416 = vmatpush3.bf16.msra.mxu1 %v1666_v25 }
  0x94   :  { %883 = vmatpush1.bf16.msra.mxu0 %v1546_v63  ;;  %1417 = vmatprep.subr.bf16.mxu1 %v1667_v28  ;;  %v1650_v63 = vld [vmem:[#allocation7 + $0x350] ss:$8 sps:$4 sm:$0xff]  }
  0x95   :  { %884 = vmatprep.subr.bf16.mxu0 %v1551_v2  ;;  %v1663_v2 = vld [vmem:[#allocation7 + $0x374] ss:$8 sps:$4 sm:$0xff]  }
  0x97   :  { %1418 = vmatpush3.bf16.msra.mxu1 %v1668_v30 }
  0x98   :  { %885 = vmatpush1.bf16.msra.mxu0 %v1549_v5  ;;  %1419 = vmatprep.subr.bf16.mxu1 %v1669_v32  ;;  %v1675_v5 = vld [vmem:[#allocation9 + $0x68] sm:$0xff]  }
  0x99   :  { %886 = vmatprep.subr.bf16.mxu0 %v1554_v8  ;;  %v1678_v8 = vld [vmem:[#allocation9 + $0x30] sm:$0xff]  }
  0x9b   :  { %1420 = vmatpush3.bf16.msra.mxu1 %v1670_v34  ;;  %v1681_v34 = vld [vmem:[#allocation10] sm:$0xff]  }
  0x9c   :  { %887 = vmatpush1.bf16.msra.mxu0 %v1552_v9  ;;  %1421 = vmatprep.subr.bf16.mxu1 %v1671_v36  ;;  %v1679_v9 = vld [vmem:[#allocation9 + $0x78] sm:$0xff]   ;;  %v1682_v36 = vld [vmem:[#allocation10 + $0x8] sm:$0xff]  }
  0x9d   :  { %888 = vmatprep.subr.bf16.mxu0 %v1557_v12 }
  0x9f   :  { %1422 = vmatpush3.bf16.msra.mxu1 %v1672_v38  ;;  %v1684_v38 = vld [vmem:[#allocation10 + $0x18] sm:$0xff]  }
  0xa0   :  { %889 = vmatpush1.bf16.msra.mxu0 %v1555_v13  ;;  %1423 = vmatprep.subr.bf16.mxu1 %v1673_v40  ;;  %v1686_v40 = vld [vmem:[#allocation10 + $0x28] sm:$0xff]  }
  0xa1   :  { %890 = vmatprep.subr.bf16.mxu0 %v1560_v16  ;;  %v201_v16 = vlaneseq }
  0xa3   :  { %1424 = vmatpush3.bf16.msra.mxu1 %v1674_v42  ;;  %v1688_v42 = vld [vmem:[#allocation10 + $0x38] sm:$0xff]  }
  0xa4   :  { %891 = vmatpush1.bf16.msra.mxu0 %v1558_v17  ;;  %1425 = vmatprep.subr.bf16.mxu1 %v1675_v5  ;;  %v202_v17 = vshrl.u32 %v201_v16, 7 }
  0xa5   :  { %892 = vmatprep.subr.bf16.mxu0 %v1566_v18 }
  0xa6   :  { %v203_v18 = vsub.s32 0, %v202_v17  ;;  %v207_v20 = vsub.s32 1, %v202_v17 }
  0xa7   :  { %1426 = vmatpush3.bf16.msra.mxu1 %v1676_v6 }
  0xa8   :  { %893 = vmatpush1.bf16.msra.mxu0 %v1564_v22  ;;  %1427 = vmatprep.subr.bf16.mxu1 %v1677_v7  ;;  %v204_v21 = vrot.slane %v199_v19, %v203_v18  ;;  %v208_v22 = vrot.slane %v199_v19, %v207_v20 }
  0xa9   :  { %894 = vmatprep.subr.bf16.mxu0 %v1572_v24 }
  0xab   :  { %1428 = vmatpush3.bf16.msra.mxu1 %v1678_v8 }
  0xac   :  { %895 = vmatpush1.bf16.msra.mxu0 %v1570_v26  ;;  %1429 = vmatprep.subr.bf16.mxu1 %v1679_v9 }
  0xad   :  { %896 = vmatprep.subr.bf16.mxu0 %v1578_v29 }
  0xaf   :  { %1430 = vmatpush3.bf16.msra.mxu1 %v1680_v10 }
  0xb0   :  { %897 = vmatpush1.bf16.msra.mxu0 %v1576_v31  ;;  %1446 = vmatprep.subr.bf16.mxu1 %v1816_v11 }
  0xb1   :  { %898 = vmatprep.subr.bf16.mxu0 %v1584_v33 }
  0xb4   :  { %899 = vmatpush1.bf16.msra.mxu0 %v1582_v35 }
  0xb5   :  { %900 = vmatprep.subr.bf16.mxu0 %v1590_v37  ;;  %v1683_v37 = vld [vmem:[#allocation10 + $0x10] sm:$0xff]  }
  0xb8   :  { %901 = vmatpush1.bf16.msra.mxu0 %v1588_v39  ;;  %v1685_v39 = vld [vmem:[#allocation10 + $0x20] sm:$0xff]  }
  0xb9   :  { %902 = vmatprep.subr.bf16.mxu0 %v1596_v41  ;;  %v1687_v41 = vld [vmem:[#allocation10 + $0x30] sm:$0xff]  }
  0xbc   :  { %903 = vmatpush1.bf16.msra.mxu0 %v1594_v43 }
  0xbd   :  { %904 = vmatprep.subr.bf16.mxu0 %v1602_v44  ;;  %v1389_v44 = vld [vmem:[%s1950_s5] ss:$0 sm:$0xff]  ;;  %s1777_s5 = scalar_lea.vmem %s1260_s11, 128 }
  0xbe   :  { %p1778_p4 = scmp.ne.s32.totalorder %s1260_s11, %s1777_s5  ;;  %p1783_p6 = scmp.lt.s32.totalorder %s1777_s5, %s1777_s5 }
  0xc0   :  { %905 = vmatpush1.bf16.msra.mxu0 %v1600_v45  ;;  %p1784_p7 = por %p1783_p6, %p1782_p5 }
  0xc1   :  { %906 = vmatprep.subr.bf16.mxu0 %v1608_v46 }
  0xc2   :  { %p1785_p8 = pnand %p1784_p7, %p1778_p4 }
  0xc4   :  { %907 = vmatpush1.bf16.msra.mxu0 %v1606_v47 }
  0xc5   :  { %908 = vmatprep.subr.bf16.mxu0 %v1614_v48 }
  0xc8   :  { %909 = vmatpush1.bf16.msra.mxu0 %v1612_v49 }
  0xc9   :  { %919 = vmatprep.subr.bf16.mxu0 %v1622_v50 }
  0xcb   :  { %911 = vmatmul.mubr.bf16.vlgmr.msra.gmra.mrb[0].mxu0 %v1274_v51 }
  0xcc   :  { %920 = vmatpush1.bf16.msra.mxu0 %v1620_v52  ;;  %951 = vmatprep.mubr.bf16.mxu0 %v1815_v56  ;;  %v1406_v52 = vld [vmem:[%s1952_s7] ss:$0 sm:$0xff] }
  0xcd   :  { %921 = vmatprep.subr.bf16.mxu0 %v1628_v54 }
  0xd0   :  { %922 = vmatpush1.bf16.msra.mxu0 %v1626_v55 }
  0xd1   :  { %923 = vmatprep.subr.bf16.mxu0 %v1634_v57 }
  0xd4   :  { %924 = vmatpush1.bf16.msra.mxu0 %v1632_v58 }
  0xd5   :  { %925 = vmatprep.subr.bf16.mxu0 %v1640_v59 }
  0xd8   :  { %926 = vmatpush1.bf16.msra.mxu0 %v1638_v60 }
  0xd9   :  { %927 = vmatprep.subr.bf16.mxu0 %v1646_v61 }
  0xdc   :  { %928 = vmatpush1.bf16.msra.mxu0 %v1644_v53 }
  0xdd   :  { %929 = vmatprep.subr.bf16.mxu0 %v1652_v62 }
  0xe0   :  { %930 = vmatpush1.bf16.msra.mxu0 %v1650_v63 }
  0xe1   :  { %931 = vmatprep.subr.bf16.mxu0 %v1658_v0 }
  0xe4   :  { %932 = vmatpush1.bf16.msra.mxu0 %v1656_v1 }
  0xe5   :  { %933 = vmatprep.subr.bf16.mxu0 %v1663_v2 }
  0xe8   :  { %934 = vmatpush1.bf16.msra.mxu0 %v1661_v3 }
  0xeb   :  { %952 = vmatmul.mubr.bf16.vlgmr.msra.gmra.mrb[0].mxu0 %v1664_v4 }
 0x165   :  { %v830_v12 = vpop.f32.mrb[0].mxu1 }
 0x166   :  { %v832_v13 = vpop.f32.mrb[1].mxu1  ;;  %v831_v23 = vadd.f32 %v830_v12, %v204_v21 }
 0x167   :  { %v834_v14 = vpop.f32.mrb[2].mxu1  ;;  %v833_v24 = vadd.f32 %v832_v13, %v208_v22 }
 0x168   :  { %v835_v15 = vpop.f32.mrb[3].mxu1 }
 0x1be   :  { %v953_v25 = vpop.f32.mrb[0].mxu0 }
 0x1bf   :  { %v1467_v26 = vadd.f32 %v953_v25, %v831_v23  ;;  %v955_v27 = vpop.f32.mrb[1].mxu0 }
 0x1c0   :  { %v1469_v28 = vadd.f32 %v955_v27, %v833_v24  ;;  %v957_v29 = vpop.f32.mrb[2].mxu0 }
 0x1c1   :  { %v960_v30 = vmax.f32 %v1467_v26, 0.0  ;;  %v958_v31 = vpop.f32.mrb[3].mxu0 }
 0x1c2   :  { %v961_v32 = vmax.f32 %v1469_v28, 0.0 }
 0x1c3   :  { %v962_v35 = vpack.c.bf16 %v960_v30, %v960_v30 }
 0x1c4   :  { %v963_v33 = vpack.c.bf16 %v961_v32, %v961_v32 }
 0x1c6   :  { %1131 = vmatprep.mubr.bf16.mxu1 %v963_v33 }
 0x1c7   :  { %1132 = vmatmul.mubr.bf16.vlgmr.msra.gmra.mrb[4].mxu1 %v962_v35 }
 0x1c8   :  { %1447 = vmatpush3.bf16.msra.mxu1 %v1681_v34  ;;  %1462 = vmatprep.mubr.msk.bf16.mxu1 %vm1817_vm0, %v1816_v11 }
 0x1c9   :  { %1448 = vmatprep.subr.bf16.mxu1 %v1816_v11 }
 0x1cc   :  { %1449 = vmatpush3.bf16.msra.mxu1 %v1682_v36 }
 0x1cd   :  { %1450 = vmatprep.subr.bf16.mxu1 %v1816_v11 }
 0x1d0   :  { %1451 = vmatpush3.bf16.msra.mxu1 %v1683_v37 }
 0x1d1   :  { %1452 = vmatprep.subr.bf16.mxu1 %v1816_v11 }
 0x1d4   :  { %1453 = vmatpush3.bf16.msra.mxu1 %v1684_v38 }
 0x1d5   :  { %1454 = vmatprep.subr.bf16.mxu1 %v1816_v11 }
 0x1d8   :  { %1455 = vmatpush3.bf16.msra.mxu1 %v1685_v39 }
 0x1d9   :  { %1456 = vmatprep.subr.bf16.mxu1 %v1816_v11 }
 0x1dc   :  { %1457 = vmatpush3.bf16.msra.mxu1 %v1686_v40 }
 0x1dd   :  { %1458 = vmatprep.subr.bf16.mxu1 %v1816_v11 }
 0x1e0   :  { %1459 = vmatpush3.bf16.msra.mxu1 %v1687_v41 }
 0x1e1   :  { %1460 = vmatprep.subr.bf16.mxu1 %v1816_v11 }
 0x1e4   :  { %1461 = vmatpush3.bf16.msra.mxu1 %v1688_v42 }
 0x29a   :  { %v1431_v43 = vpop.f32.mrb[4].mxu1 }
 0x29b   :  { %v1432_v45 = vpop.f32.mrb[5].mxu1 }
 0x29c   :  { %v1433_v46 = vadd.f32 %v1432_v45, %v1431_v43  ;;  %v1434_v47 = vpop.f32.mrb[6].mxu1 }
 0x29d   :  { %v1435_v48 = vpop.f32.mrb[7].mxu1 }
 0x29e   :  { %v1134_v49 = vadd.f32 %v1433_v46, %v1389_v44 }
 0x2a0   :  { %v1139_v50 = vmax.f32 %v1134_v49, 0.0 }
 0x2a2   :  { %v1140_v51 = vpack.c.bf16 %v1139_v50, %v1139_v50 }
 0x2a4   :  { %1463 = vmatmul.mubr.bf16.vlgmr.msra.gmra.mrb[8].mxu1 %v1140_v51 }
 0x377   :  { %v1246_v54 = vpop.f32.mrb[8].mxu1 }
 0x378   :  { %v1247_v55 = vadd.f32 %v1406_v52, %v1246_v54  ;;  %v1464_v56 = vpop.f32.mrb[9].mxu1 }
 0x379   :  { %v1249_v57 = vpop.f32.mrb[10].mxu1 }
 0x37a   :  { %1252 = vst [vmem:[#allocation12] sm:$0xff] %v1247_v55  ;;  %v1465_v58 = vpop.f32.mrb[11].mxu1 }
 0x37b   :  { %1788 = shalt.err (!%p1785_p8)
}
 0x37c   :  { %s1789_s7 = scalar_lea.hbm %s1953_s8, 128 }
 0x37d   :  { %p1790_p9 = scmp.ne.s32.totalorder %s1953_s8, %s1789_s7  ;;  %p1793_p10 = scmp.lt.u32.totalorder %s1789_s7, %s1953_s8 }
 0x37f   :  { %p1795_p11 = pnand %p1793_p10, %p1790_p9 }
 0x381   :  { %1798 = shalt.err (!%p1795_p11)
}
 0x382   :  { %1262 = dma.vmem_to_hbm [thread:$0]  %s1260_s11, 128, %s1953_s8, [#allocation6]  }
 0x383   :  { %1805 = dma.done.wait [#allocation6], 128  }
 0x384   :  { %1806 = vsyncadd [#allocation6], 4294967168 }
 0x385   :  { %1266 = vsyncpa [#allocation5], 1 }
 0x386   :  { %1267 = vsyncpa [#allocation8], 1 }
 0x387   :  { %1268 = vsyncpa [#allocation11], 1 }
 0x388   :  { %1269 = vsyncpa [#allocation6], 1 }

</bundles_post_ra>
